<compile_context>
chip_gen: v7x
topology: tpu7x:2x2x1
jax: 0.10.0
libtpu: 0.0.40
codegen_flags: <defaults>
</compile_context>

<pallas_src>
import functools
import math

import jax
import jax.numpy as jnp
from jax.experimental import pallas as pl
from jax.experimental.pallas import tpu as pltpu


def _round_up(x, m):
    return (x + m - 1) // m * m


# ----------------------------- Pallas kernel ------------------------------

def _stem_pool_proj_kernel(p_ref, w_ref, bias_ref, proj_ref, o_ref, acc_ref):
    """Fused conv-as-GEMM (+folded BN) + GELU + global mean-pool + projection.

    Grid = (B, n_spatial_tiles). Batch axis is "parallel" (megacore shardable);
    the spatial-tile axis is a reduction ("arbitrary") whose output BlockSpec
    revisits the same block -> accumulator pattern.

    p_ref:    [TILE_HW, K_pad]  bf16 im2col patches for one (image, tile)
    w_ref:    [K_pad, C_pad]    bf16 conv weight with BN scale folded in
    bias_ref: [1, C_pad]        f32 folded-BN bias            (tile-invariant)
    proj_ref: [C_pad, P_pad]    f32 GlobalPool2D projection * 1/HW
    o_ref:    [1, P_pad]        f32 per-image embedding (written on last tile)
    acc_ref:  [1, C_pad]        f32 running channel sums (VMEM scratch)
    """
    t = pl.program_id(1)

    @pl.when(t == 0)
    def _():
        acc_ref[...] = jnp.zeros_like(acc_ref)

    # bf16 x bf16 -> f32 accumulation on the MXU (BN scale already folded
    # into w_ref, so only the bias add remains on the VPU).
    y = jnp.dot(p_ref[...], w_ref[...], preferred_element_type=jnp.float32)
    y = y + bias_ref[...]
    # TODO(synk): PyTorch nn.GELU() defaults to the exact erf form; the tanh
    #             approximation is used here for robust Mosaic lowering.
    y = jax.nn.gelu(y, approximate=True)

    # Partial global pool: accumulate per-channel sums for this spatial tile
    # (cross-sublane reduce -> XLU slot, off the VALU critical path).
    acc_ref[...] += jnp.sum(y, axis=0, keepdims=True)

    @pl.when(t == pl.num_programs(1) - 1)
    def _():
        # proj_ref already carries the 1/HW mean normalization.
        o_ref[...] = jnp.dot(acc_ref[...], proj_ref[...],
                             preferred_element_type=jnp.float32)


# ------------------------------ JAX wrapper -------------------------------

def _im2col(x_pad, kh, kw, out_h, out_w):
    """Extract KHxKW patches (stride 1). Pure layout glue in JAX."""
    cols = []
    for i in range(kh):
        for j in range(kw):
            cols.append(x_pad[:, i:i + out_h, j:j + out_w, :])
    return jnp.concatenate(cols, axis=-1)                # [B, H, W, KH*KW*Cin]


def mci_forward(x_nchw, params, *, tile_hw=512):
    """Forward pass: stem conv-BN-GELU + GlobalPool2D head.

    x_nchw: [B, Cin, H, W] float32 (PyTorch NCHW convention).
    returns: [B, projection_dim] float32 image embedding.
    """
    x = jnp.transpose(x_nchw, (0, 2, 3, 1))              # -> NHWC
    b, h, w, cin = x.shape
    hw = h * w

    stem_w = params["stem_w"]                            # [KH, KW, Cin, Chid]
    kh, kw, _, chid = stem_w.shape
    proj = params["proj"]                                # [Chid, P]
    p_dim = proj.shape[1]

    # ---- lane-friendly padded sizes --------------------------------------
    k_dim = kh * kw * cin
    k_pad = _round_up(k_dim, 32)       # contraction dim; kept small to limit
                                       # the im2col HBM blowup (largest input)
    c_pad = _round_up(chid, 128)       # lane-dense hidden channels
    p_pad = _round_up(p_dim, 128)      # lane-dense projection output

    # ---- im2col (layout glue), bf16 for MXU + halved DMA bytes -----------
    # TODO(synk): at real resolutions, replace im2col with shifted-accumulate
    #             conv tiles (halo DMA) to remove the KH*KW HBM blowup.
    pad = kh // 2
    x_p = jnp.pad(x, ((0, 0), (pad, pad), (pad, pad), (0, 0)))
    patches = _im2col(x_p, kh, kw, h, w).reshape(b, hw, k_dim)
    patches = jnp.pad(patches.astype(jnp.bfloat16),
                      ((0, 0), (0, 0), (0, k_pad - k_dim)))

    # Fold the BN scale into the conv weight (one-time weight transform),
    # and the 1/HW mean normalization into the projection weight.
    w_folded = stem_w.reshape(k_dim, chid) * params["bn_scale"]   # [K, Chid]
    w2d = jnp.pad(w_folded.astype(jnp.bfloat16),
                  ((0, k_pad - k_dim), (0, c_pad - chid)))
    bias = jnp.pad(params["bn_bias"], ((0, 0), (0, c_pad - chid)))
    proj_p = jnp.pad(proj * (1.0 / hw),
                     ((0, c_pad - chid), (0, p_pad - p_dim)))

    # ---- spatial tiling ---------------------------------------------------
    tile = math.gcd(hw, tile_hw)
    assert tile % 8 == 0, f"spatial tile {tile} must be a sublane multiple"
    n_tiles = hw // tile

    out_padded = pl.pallas_call(
        _stem_pool_proj_kernel,
        out_shape=jax.ShapeDtypeStruct((b, 1, p_pad), jnp.float32),
        grid_spec=pltpu.PrefetchScalarGridSpec(
            num_scalar_prefetch=0,
            grid=(b, n_tiles),
            in_specs=[
                # per-(image, tile) patch block; batch dim squeezed out.
                pl.BlockSpec((None, tile, k_pad), lambda bi, ti: (bi, ti, 0)),
                # tile-invariant operands: constant block index -> DMA'd once.
                pl.BlockSpec((k_pad, c_pad), lambda bi, ti: (0, 0)),
                pl.BlockSpec((1, c_pad), lambda bi, ti: (0, 0)),
                pl.BlockSpec((c_pad, p_pad), lambda bi, ti: (0, 0)),
            ],
            # Same output block across the spatial-tile axis -> accumulator.
            out_specs=pl.BlockSpec((None, 1, p_pad), lambda bi, ti: (bi, 0, 0)),
            scratch_shapes=[pltpu.VMEM((1, c_pad), jnp.float32)],
        ),
        compiler_params=pltpu.CompilerParams(
            dimension_semantics=("parallel", "arbitrary"),
            vmem_limit_bytes=32 * 1024 * 1024,   # fits v7x's 64 MiB VMEM too
        ),
    )(patches, w2d, bias, proj_p)

    return out_padded[:, 0, :p_dim]


# ------------------------------ parameters --------------------------------

def init_params(key, cin=3, chid=32, projection_dim=16, kh=3, kw=3):
    """Deterministic synthetic parameters (shapes follow the module's config)."""
    k1, k2, k3, k4 = jax.random.split(key, 4)
    # Conv weight stored as [KH, KW, Cin, Cout].
    stem_w = 0.1 * jax.random.normal(k1, (kh, kw, cin, chid), jnp.float32)
    # BatchNorm at init stats (mean=0, var=1) with random affine, folded.
    gamma = 1.0 + 0.1 * jax.random.normal(k2, (chid,), jnp.float32)
    beta = 0.1 * jax.random.normal(k3, (chid,), jnp.float32)
    running_mean = jnp.zeros((chid,), jnp.float32)
    running_var = jnp.ones((chid,), jnp.float32)
    eps = 1e-5
    scale = gamma / jnp.sqrt(running_var + eps)
    bias = beta - running_mean * scale
    # GlobalPool2D.proj = (in_dim ** -0.5) * randn(in_dim, out_dim)
    proj = (chid ** -0.5) * jax.random.normal(
        k4, (chid, projection_dim), jnp.float32)
    return {
        "stem_w": stem_w,
        "bn_scale": scale.reshape(1, chid),
        "bn_bias": bias.reshape(1, chid),
        "proj": proj,
    }


def _reference_forward(x_nchw, params):
    """Pure-JAX f32 reference (unfused module math, no Pallas)."""
    x = jnp.transpose(x_nchw, (0, 2, 3, 1))
    b, h, w, cin = x.shape
    stem_w = params["stem_w"]
    kh, kw, _, chid = stem_w.shape
    pad = kh // 2
    x_p = jnp.pad(x, ((0, 0), (pad, pad), (pad, pad), (0, 0)))
    patches = _im2col(x_p, kh, kw, h, w).reshape(b * h * w, kh * kw * cin)
    y = patches @ stem_w.reshape(kh * kw * cin, chid)
    y = y * params["bn_scale"] + params["bn_bias"]
    y = jax.nn.gelu(y, approximate=True)
    pooled = jnp.mean(y.reshape(b, h * w, chid), axis=1)
    return pooled @ params["proj"]


if __name__ == "__main__":
    key = jax.random.PRNGKey(0)
    k_x, k_p = jax.random.split(key)

    batch, cin, height, width = 2, 3, 16, 16             # small image-like input
    projection_dim = 16

    x = jax.random.normal(k_x, (batch, cin, height, width), jnp.float32)
    params = init_params(k_p, cin=cin, chid=32, projection_dim=projection_dim)

    fwd = jax.jit(functools.partial(mci_forward, tile_hw=128))
    out = jax.block_until_ready(fwd(x, params))

    assert out.shape == (batch, projection_dim), out.shape
    assert jnp.all(jnp.isfinite(out))

    ref = _reference_forward(x, params)
    assert jnp.allclose(out, ref, rtol=2e-2, atol=2e-2), (
        float(jnp.max(jnp.abs(out - ref))))
    print("KERNEL_OK")
</pallas_src>

<mosaic_0001>
module attributes {stable_mosaic.version = 11 : i64} {
  func.func @_stem_pool_proj_kernel(%arg0: i32, %arg1: i32, %arg2: memref<1x128x32xbf16, #tpu.memory_space<vmem>>, %arg3: memref<32x128xbf16, #tpu.memory_space<vmem>>, %arg4: memref<1x128xf32, #tpu.memory_space<vmem>>, %arg5: memref<128x128xf32, #tpu.memory_space<vmem>>, %arg6: memref<1x1x128xf32, #tpu.memory_space<vmem>>, %arg7: memref<1x128xf32, #tpu.memory_space<vmem>>) attributes {dimension_semantics = [#tpu.dimension_semantics<parallel>, #tpu.dimension_semantics<arbitrary>], iteration_bounds = array<i64: 2, 2>, scalar_prefetch = 0 : i64, scratch_operands = 1 : i64, tpu.core_type = #tpu.core_type<tc>, window_params = [{transform_indices = @transform_0, window_bounds = array<i64: 1, 128, 32>}, {pipeline_mode = #tpu.pipeline_mode<synchronous>, transform_indices = @transform_1, window_bounds = array<i64: 32, 128>}, {pipeline_mode = #tpu.pipeline_mode<synchronous>, transform_indices = @transform_2, window_bounds = array<i64: 1, 128>}, {pipeline_mode = #tpu.pipeline_mode<synchronous>, transform_indices = @transform_3, window_bounds = array<i64: 128, 128>}, {transform_indices = @transform_4, window_bounds = array<i64: 1, 1, 128>}]} {
    %c0_i32 = arith.constant 0 : i32
    %0 = arith.cmpi eq, %arg1, %c0_i32 : i32
    %1 = arith.extui %0 : i1 to i32
    %c0_i32_0 = arith.constant 0 : i32
    %2 = arith.cmpi ne, %1, %c0_i32_0 : i32
    scf.if %2 {
      %cst_17 = arith.constant 0.000000e+00 : f32
      %31 = vector.broadcast %cst_17 : f32 to vector<1x128xf32>
      %c0_18 = arith.constant 0 : index
      %c0_19 = arith.constant 0 : index
      %32 = vector.load %arg7[%c0_18, %c0_19] : memref<1x128xf32, #tpu.memory_space<vmem>>, vector<1x128xf32>
      tpu.vector_store %arg7[%c0_18, %c0_19], %31 {strides = array<i32>} : memref<1x128xf32, #tpu.memory_space<vmem>>, vector<1x128xf32>,
    } else {
    }
    %c0 = arith.constant 0 : index
    %c0_1 = arith.constant 0 : index
    %c0_2 = arith.constant 0 : index
    %3 = vector.load %arg2[%c0, %c0_1, %c0_2] : memref<1x128x32xbf16, #tpu.memory_space<vmem>>, vector<1x128x32xbf16>
    %4 = vector.shape_cast %3 : vector<1x128x32xbf16> to vector<128x32xbf16>
    %c0_3 = arith.constant 0 : index
    %c0_4 = arith.constant 0 : index
    %5 = vector.load %arg3[%c0_3, %c0_4] : memref<32x128xbf16, #tpu.memory_space<vmem>>, vector<32x128xbf16>
    %cst = arith.constant dense<0.000000e+00> : vector<128x128xf32>
    %6 = tpu.matmul %4, %5, %cst {dimension_numbers = #tpu.dot_dimension_numbers<[1], [0], [0], [1], [0, 0, 1, 1], [], []>} : vector<128x32xbf16>, vector<32x128xbf16>, vector<128x128xf32> -> vector<128x128xf32>
    %c0_5 = arith.constant 0 : index
    %c0_6 = arith.constant 0 : index
    %7 = vector.load %arg4[%c0_5, %c0_6] : memref<1x128xf32, #tpu.memory_space<vmem>>, vector<1x128xf32>
    %8 = vector.broadcast %7 : vector<1x128xf32> to vector<128x128xf32>
    %9 = arith.addf %6, %8 : vector<128x128xf32>
    %10 = arith.mulf %9, %9 : vector<128x128xf32>
    %11 = arith.mulf %9, %10 : vector<128x128xf32>
    %cst_7 = arith.constant 4.471500e-02 : f32
    %12 = vector.broadcast %cst_7 : f32 to vector<128x128xf32>
    %13 = arith.mulf %12, %11 : vector<128x128xf32>
    %14 = arith.addf %9, %13 : vector<128x128xf32>
    %cst_8 = arith.constant 0.797884583 : f32
    %15 = vector.broadcast %cst_8 : f32 to vector<128x128xf32>
    %16 = arith.mulf %15, %14 : vector<128x128xf32>
    %17 = math.tanh %16 : vector<128x128xf32>
    %cst_9 = arith.constant 1.000000e+00 : f32
    %18 = vector.broadcast %cst_9 : f32 to vector<128x128xf32>
    %19 = arith.addf %18, %17 : vector<128x128xf32>
    %cst_10 = arith.constant 5.000000e-01 : f32
    %20 = vector.broadcast %cst_10 : f32 to vector<128x128xf32>
    %21 = arith.mulf %20, %19 : vector<128x128xf32>
    %22 = arith.mulf %9, %21 : vector<128x128xf32>
    %c0_11 = arith.constant 0 : index
    %c0_12 = arith.constant 0 : index
    %23 = vector.load %arg7[%c0_11, %c0_12] : memref<1x128xf32, #tpu.memory_space<vmem>>, vector<1x128xf32>
    %cst_13 = arith.constant dense<0.000000e+00> : vector<128xf32>
    %24 = vector.multi_reduction <add>, %22, %cst_13 [0] : vector<128x128xf32> to vector<128xf32>
    %25 = vector.shape_cast %24 : vector<128xf32> to vector<1x128xf32>
    %26 = arith.addf %23, %25 : vector<1x128xf32>
    %c0_14 = arith.constant 0 : index
    %c0_15 = arith.constant 0 : index
    %27 = vector.load %arg7[%c0_14, %c0_15] : memref<1x128xf32, #tpu.memory_space<vmem>>, vector<1x128xf32>
    tpu.vector_store %arg7[%c0_14, %c0_15], %26 {strides = array<i32>} : memref<1x128xf32, #tpu.memory_space<vmem>>, vector<1x128xf32>,
    %c1_i32 = arith.constant 1 : i32
    %28 = arith.cmpi eq, %arg1, %c1_i32 : i32
    %29 = arith.extui %28 : i1 to i32
    %c0_i32_16 = arith.constant 0 : i32
    %30 = arith.cmpi ne, %29, %c0_i32_16 : i32
    scf.if %30 {
      %c0_17 = arith.constant 0 : index
      %c0_18 = arith.constant 0 : index
      %31 = vector.load %arg7[%c0_17, %c0_18] : memref<1x128xf32, #tpu.memory_space<vmem>>, vector<1x128xf32>
      %c0_19 = arith.constant 0 : index
      %c0_20 = arith.constant 0 : index
      %32 = vector.load %arg5[%c0_19, %c0_20] : memref<128x128xf32, #tpu.memory_space<vmem>>, vector<128x128xf32>
      %cst_21 = arith.constant dense<0.000000e+00> : vector<1x128xf32>
      %33 = tpu.matmul %31, %32, %cst_21 {dimension_numbers = #tpu.dot_dimension_numbers<[1], [0], [0], [1], [0, 0, 1, 1], [], []>} : vector<1x128xf32>, vector<128x128xf32>, vector<1x128xf32> -> vector<1x128xf32>
      %c0_22 = arith.constant 0 : index
      %c0_23 = arith.constant 0 : index
      %c0_24 = arith.constant 0 : index
      %34 = vector.load %arg6[%c0_22, %c0_23, %c0_24] : memref<1x1x128xf32, #tpu.memory_space<vmem>>, vector<1x1x128xf32>
      %35 = vector.shape_cast %34 : vector<1x1x128xf32> to vector<1x128xf32>
      %36 = vector.shape_cast %33 : vector<1x128xf32> to vector<1x1x128xf32>
      tpu.vector_store %arg6[%c0_22, %c0_23, %c0_24], %36 {strides = array<i32>} : memref<1x1x128xf32, #tpu.memory_space<vmem>>, vector<1x1x128xf32>,
    } else {
    }
    return
  }
  func.func @transform_0(%arg0: i32, %arg1: i32) -> (i32, i32, i32) {
    %c0_i32 = arith.constant 0 : i32
    %c0_i32_0 = arith.constant 0 : i32
    return %arg0, %arg1, %c0_i32 : i32, i32, i32
  }
  func.func @transform_1(%arg0: i32, %arg1: i32) -> (i32, i32) {
    %c0_i32 = arith.constant 0 : i32
    %c0_i32_0 = arith.constant 0 : i32
    %c0_i32_1 = arith.constant 0 : i32
    return %c0_i32, %c0_i32_0 : i32, i32
  }
  func.func @transform_2(%arg0: i32, %arg1: i32) -> (i32, i32) {
    %c0_i32 = arith.constant 0 : i32
    %c0_i32_0 = arith.constant 0 : i32
    %c0_i32_1 = arith.constant 0 : i32
    return %c0_i32, %c0_i32_0 : i32, i32
  }
  func.func @transform_3(%arg0: i32, %arg1: i32) -> (i32, i32) {
    %c0_i32 = arith.constant 0 : i32
    %c0_i32_0 = arith.constant 0 : i32
    %c0_i32_1 = arith.constant 0 : i32
    return %c0_i32, %c0_i32_0 : i32, i32
  }
  func.func @transform_4(%arg0: i32, %arg1: i32) -> (i32, i32, i32) {
    %c0_i32 = arith.constant 0 : i32
    %c0_i32_0 = arith.constant 0 : i32
    %c0_i32_1 = arith.constant 0 : i32
    return %arg0, %c0_i32, %c0_i32_0 : i32, i32, i32
  }
}

</mosaic_0001>

<bundles_post_ra>
// kernel: mci_forward.1
= control target key start
LH: loop header
LB: loop body
LE: loop exit
PB: predicated region body
PF: predicated region fallthrough
CT: control target
= control target key end

     0   :  { %9 = vsyncpa [#allocation4], 0  ;;  %s1502_s0 = inlined_call_operand.vmem [shape: bf16[2,256,32], index: 0, kind: input, shape index: {}]   ;;  %s1503_s1 = inlined_call_operand.vmem [shape: bf16[32,128], index: 1, kind: input, shape index: {}]   ;;  %s1504_s2 = inlined_call_operand.vmem [shape: f32[1,128], index: 2, kind: input, shape index: {}]   ;;  %s1505_s3 = inlined_call_operand.vmem [shape: f32[128,128], index: 3, kind: input, shape index: {}]   ;;  %s1506_s4 = inlined_call_operand.hbm [shape: f32[2,1,128], index: 4, kind: output, shape index: {}]  }
   0x1   :  { %11 = vsyncpa [#allocation4 + $0x1], 0  ;;  %s1160_s15 = smov 0   ;;  %s1162_s16 = smov 0  }
   0x2   :  { %s1164_s17 = smov 0   ;;  %s1166_s18 = smov 0  }
   0x3   :  { %s1168_s19 = smov 0   ;;  %s1170_s20 = smov 0  }
   0x4   :  { %s1172_s21 = smov 0   ;;  %s1174_s22 = smov 0  }
   0x5 LB: > { %s775_s23 = sadd.s32 4294967295, %s1128_s22   ;;  %s776_s24 = sadd.s32 4294967294, %s1128_s22   ;;  %s1128_s22 = sphi %s1174_s22, %s17_s22   ;;  %s1124_s21 = sphi %s1172_s21, %s1515_s21   ;;  %s1120_s20 = sphi %s1170_s20, %s1514_s20   ;;  %s1116_s19 = sphi %s1168_s19, %s1513_s19   ;;  %s1112_s18 = sphi %s1166_s18, %s1512_s18   ;;  %s1108_s17 = sphi %s1164_s17, %s1511_s17   ;;  %s1104_s16 = sphi %s1162_s16, %s1510_s16   ;;  %s1100_s15 = sphi %s1160_s15, %s1509_s15  }
   0x6   : > { %s26_s25 = sadd.s32 1, %s1120_s20  ;;  %s29_s26 = sadd.s32 1, %s1124_s21 }
   0x7   : > { %p27_p0 = scmp.ge.s32.totalorder %s26_s25, 2  ;;  %p137_p1 = scmp.ne.s32.totalorder %s1108_s17, %s1104_s16 }
   0x8   : > { %p138_p2 = scmp.eq.s32.totalorder %s775_s23, 3  ;;  %p143_p4 = scmp.ne.s32.totalorder %s1104_s16, %s1100_s15 }
   0x9   : > { %s1517_s25 = smov (%p27_p0, %s26_s25), 0  ;;  %s1519_s26 = smov (!%p27_p0, %s29_s26), %s1124_s21 }
   0xa   : > { %p1209_p3 = por %p138_p2, %p137_p1  ;;  %p31_p5 = scmp.ge.s32.totalorder %s1519_s26, 2 }
   0xb   : > { %p144_p6 = scmp.eq.s32.totalorder %s776_s24, 3  ;;  %p779_p7 = scmp.ge.s32.totalorder %s1128_s22, 1 }
   0xc   : > { %p184_p8 = scmp.lt.s32.totalorder %s1128_s22, 5  ;;  %s1521_s26 = smov (%p31_p5, %s1519_s26), 0 }
   0xd   : > { %p1219_p9 = por %p144_p6, %p143_p4  ;;  %s124_s29 = ssub.s32 %s1124_s21, %s1521_s26 }
   0xe   : > { %p185_p10 = pnand %p779_p7, %p184_p8  ;;  %s127_s30 = sadd.s32 1, %s1108_s17 }
   0xf   : > { %p125_p11 = scmp.eq.s32.totalorder %s124_s29, 0  ;;  %s211_s6 = sand.u32 (!%p185_p10), 1, %s1104_s16  }
  0x10   : > { %188 = sbr.rel (%p185_p10) target bundleno = 576 (0x240), region = 36  ;;  %s780_s7 = sshll.u32 (!%p185_p10), %s1112_s18, 4 }
  0x11   : > { %s1227_s5 = scalar_select %p125_p11, %s1108_s17, %s127_s30  }
  0x12   : > { %p214_p12 = scmp.lt.s32.totalorder (!%p185_p10), %s1116_s19, 1  ;;  %p216_p13 = scmp.lt.s32.totalorder (!%p185_p10), %s780_s7, 31 }
  0x13   : > { %s1240_s23 = scalar_lea.vmem (!%p185_p10), [#allocation3], %s211_s6  ;;  %p783_p0 = scmp.ne.s32.totalorder (!%p185_p10), %s1112_s18, 0 }
  0x17   : > { %s215_s8 = scalar_select %p214_p12, %s1116_s19, 1 }
  0x18   : > { %s1523_s7 = smov (!%p216_p13, %s780_s7), 31  ;;  %227 = sbr.rel (%p783_p0) target bundleno = 31 (0x1f), region = 40 }
  0x19   : > { %s781_s9 = sshll.u32 %s215_s8, 5  ;;  %v1130_v0 = vmov (!%p783_p0), 0.0  }
  0x1a   : > { %s219_s10 = sadd.s32 %s781_s9, %s1523_s7  ;;  %228 = vst [vmem:[#allocation2] sm:$0x1] (!%p783_p0), %v1130_v0 }
  0x1b   : > { %s782_s11 = sshll.u32 %s219_s10, 2 }
  0x1c   : > { %s1236_s14 = scalar_lea.vmem %s1502_s0, %s782_s11 }
  0x1f PF: > { %v992_v1 = vld [vmem:[%s1503_s1] sm:$0xff]   ;;  %v993_v2 = vld [vmem:[%s1503_s1 + $0x8] sm:$0xff]   ;;  %vm308_vm0 = vcmask 261120   ;;  %v998_v7 = vld [vmem:[%s1236_s14 + $0x10] sm:$0xff]   ;;  %p803_p1 = scmp.ne.s32.totalorder %s1112_s18, 1 }
  0x20   : > { %834 = vmatprep.subr.bf16.mxu0 %v992_v1  ;;  %913 = vmatprep.subr.bf16.mxu1 %v992_v1  ;;  %v994_v3 = vld [vmem:[%s1236_s14] sm:$0xff]   ;;  %v996_v5 = vld [vmem:[%s1236_s14 + $0x8] sm:$0xff]   ;;  %v999_v8 = vld [vmem:[%s1236_s14 + $0x30] sm:$0xff]   ;;  %vm1132_vm1 = vmmov (!%p803_p1), 0  }
  0x21   : > { %835 = vmatpush3.bf16.msra.mxu0 %v992_v1  ;;  %915 = vmatpush3.bf16.msra.mxu1 %v992_v1  ;;  %v995_v4 = vld [vmem:[%s1236_s14 + $0x20] sm:$0xff]   ;;  %v997_v6 = vld [vmem:[%s1236_s14 + $0x28] sm:$0xff]   ;;  %v1000_v9 = vld [vmem:[%s1236_s14 + $0x18] sm:$0xff]  }
  0x22   : > { %836 = vmatprep.subr.bf16.mxu0 %v993_v2  ;;  %914 = vmatprep.subr.bf16.mxu1 %v993_v2  ;;  %v1001_v10 = vld [vmem:[%s1236_s14 + $0x38] sm:$0xff]   ;;  %v1268_v11 = vld [vmem:[%s1504_s2] ss:$0 sm:$0xff] }
  0x23   : > { %838 = vmatprep.mubr.msk.bf16.mxu0 %vm308_vm0, %v994_v3  ;;  %846 = vmatprep.mubr.msk.bf16.mxu1 %vm308_vm0, %v995_v4 }
  0x25   : > { %837 = vmatpush3.bf16.msra.mxu0 %v993_v2  ;;  %916 = vmatpush3.bf16.msra.mxu1 %v993_v2 }
  0x28   : > { %839 = vmatmul.mubr.msk.bf16.vlgmr.msra.gmra.mrb[0].mxu0 %vm308_vm0, %v996_v5  ;;  %847 = vmatmul.mubr.msk.bf16.vlgmr.msra.gmra.mrb[0].mxu1 %vm308_vm0, %v997_v6 }
  0x29   : > { %842 = vmatprep.mubr.msk.bf16.mxu0 %vm308_vm0, %v998_v7  ;;  %850 = vmatprep.mubr.msk.bf16.mxu1 %vm308_vm0, %v999_v8 }
  0x30   : > { %843 = vmatmul.mubr.msk.bf16.gmra.mrb[4].mxu0 %vm308_vm0, %v1000_v9  ;;  %851 = vmatmul.mubr.msk.bf16.gmra.mrb[4].mxu1 %vm308_vm0, %v1001_v10 }
  0xfb   : > { %v840_v12 = vpop.f32.mrb[0].mxu0  ;;  %v848_v13 = vpop.f32.mrb[0].mxu1 }
  0xfc   : > { %v1271_v14 = vadd.f32 %v840_v12, %v1268_v11  ;;  %v367_v15 = vpop.f32.mrb[1].mxu0  ;;  %v399_v16 = vpop.f32.mrb[1].mxu1  ;;  %v1298_v48 = vadd.f32 %v848_v13, %v1268_v11 }
  0xfd   : > { %v1274_v17 = vadd.f32 %v1268_v11, %v367_v15  ;;  %v841_v18 = vpop.f32.mrb[2].mxu0  ;;  %v849_v19 = vpop.f32.mrb[2].mxu1  ;;  %v1302_v51 = vadd.f32 %v1268_v11, %v399_v16 }
  0xfe   : > { %v432_v20 = vmul.f32 %v1271_v14, %v1271_v14  ;;  %v1279_v21 = vadd.f32 %v841_v18, %v1268_v11  ;;  %v370_v22 = vpop.f32.mrb[3].mxu0  ;;  %v402_v23 = vpop.f32.mrb[3].mxu1  ;;  %v440_v57 = vmul.f32 %v1298_v48, %v1298_v48  ;;  %v1325_v62 = vadd.f32 %v849_v19, %v1268_v11 }
  0xff   : > { %v430_v24 = vmul.f32 %v1274_v17, %v1274_v17  ;;  %v1284_v25 = vadd.f32 %v1268_v11, %v370_v22  ;;  %v1315_v58 = vadd.f32 %v1268_v11, %v402_v23  ;;  %v438_v60 = vmul.f32 %v1302_v51, %v1302_v51 }
 0x100   : > { %v448_v26 = vmul.f32 %v432_v20, %v1271_v14  ;;  %v433_v27 = vmul.f32 %v1279_v21, %v1279_v21  ;;  %v456_v2 = vmul.f32 %v440_v57, %v1298_v48  ;;  %v441_v7 = vmul.f32 %v1325_v62, %v1325_v62 }
 0x101   : > { %v446_v28 = vmul.f32 %v430_v24, %v1274_v17  ;;  %v431_v29 = vmul.f32 %v1284_v25, %v1284_v25  ;;  %v439_v3 = vmul.f32 %v1315_v58, %v1315_v58  ;;  %v454_v4 = vmul.f32 %v438_v60, %v1302_v51 }
 0x102   : > { %v464_v30 = vmul.f32 0.044715, %v448_v26  ;;  %v449_v31 = vmul.f32 %v433_v27, %v1279_v21  ;;  %v472_v15 = vmul.f32 0.044715, %v456_v2  ;;  %v457_v24 = vmul.f32 %v441_v7, %v1325_v62 }
 0x103   : > { %v462_v32 = vmul.f32 0.044715, %v446_v28  ;;  %v447_v33 = vmul.f32 %v431_v29, %v1284_v25  ;;  %v844_v34 = vpop.f32.mrb[4].mxu0  ;;  %v852_v35 = vpop.f32.mrb[4].mxu1  ;;  %v455_v16 = vmul.f32 %v439_v3, %v1315_v58  ;;  %v470_v19 = vmul.f32 0.044715, %v454_v4 }
 0x104   : > { %v480_v36 = vadd.f32 %v464_v30, %v1271_v14  ;;  %v465_v37 = vmul.f32 0.044715, %v449_v31  ;;  %v383_v38 = vpop.f32.mrb[5].mxu0  ;;  %v415_v39 = vpop.f32.mrb[5].mxu1  ;;  %v1305_v53 = vadd.f32 %v844_v34, %v1268_v11  ;;  %v1348_v26 = vadd.f32 %v852_v35, %v1268_v11 }
 0x105   : > { %v478_v40 = vadd.f32 %v462_v32, %v1274_v17  ;;  %v463_v41 = vmul.f32 0.044715, %v447_v33  ;;  %v845_v42 = vpop.f32.mrb[6].mxu0  ;;  %v853_v43 = vpop.f32.mrb[6].mxu1  ;;  %v1310_v56 = vadd.f32 %v1268_v11, %v383_v38  ;;  %v1340_v10 = vadd.f32 %v1268_v11, %v415_v39 }
 0x106   : > { %v496_v44 = vmul.f32 0.7978846, %v480_v36  ;;  %v481_v45 = vadd.f32 %v465_v37, %v1279_v21  ;;  %v386_v46 = vpop.f32.mrb[7].mxu0  ;;  %v418_v47 = vpop.f32.mrb[7].mxu1  ;;  %v436_v55 = vmul.f32 %v1305_v53, %v1305_v53  ;;  %v1318_v59 = vadd.f32 %v845_v42, %v1268_v11 }
 0x107   : > { %v494_v49 = vmul.f32 0.7978846, %v478_v40  ;;  %v479_v50 = vadd.f32 %v463_v41, %v1284_v25  ;;  %v434_v61 = vmul.f32 %v1310_v56, %v1310_v56  ;;  %v1343_v12 = vadd.f32 %v1268_v11, %v386_v46 }
 0x108   : > { %v497_v52 = vmul.f32 0.7978846, %v481_v45  ;;  %1002 = vtanh.f32 %v496_v44  ;;  %v437_v63 = vmul.f32 %v1318_v59, %v1318_v59  ;;  %v452_v0 = vmul.f32 %v436_v55, %v1305_v53 }
 0x109   : > { %1004 = vtanh.f32 %v494_v49  ;;  %v495_v54 = vmul.f32 0.7978846, %v479_v50  ;;  %v450_v1 = vmul.f32 %v434_v61, %v1310_v56  ;;  %v442_v29 = vmul.f32 %v1340_v10, %v1340_v10 }
 0x10a   : > { %1006 = vtanh.f32 %v497_v52  ;;  %v453_v6 = vmul.f32 %v437_v63, %v1318_v59  ;;  %v468_v8 = vmul.f32 0.044715, %v452_v0  ;;  %v435_v30 = vmul.f32 %v1343_v12, %v1343_v12 }
 0x10b   : > { %1008 = vtanh.f32 %v495_v54  ;;  %v466_v5 = vmul.f32 0.044715, %v450_v1  ;;  %v471_v32 = vmul.f32 0.044715, %v455_v16  ;;  %v1356_v33 = vadd.f32 %v1268_v11, %v418_v47 }
 0x10c   : > { %v469_v22 = vmul.f32 0.044715, %v453_v6  ;;  %v484_v28 = vadd.f32 %v468_v8, %v1305_v53  ;;  %v488_v36 = vadd.f32 %v472_v15, %v1298_v48  ;;  %v486_v35 = vadd.f32 %v470_v19, %v1302_v51 }
 0x10d   : > { %v482_v9 = vadd.f32 %v466_v5, %v1310_v56  ;;  %v1362_v38 = vadd.f32 %v853_v43, %v1268_v11  ;;  %v473_v41 = vmul.f32 0.044715, %v457_v24  ;;  %v444_v45 = vmul.f32 %v1348_v26, %v1348_v26 }
 0x10e   : > { %v485_v37 = vadd.f32 %v469_v22, %v1318_v59  ;;  %v500_v44 = vmul.f32 0.7978846, %v484_v28  ;;  %v458_v46 = vmul.f32 %v442_v29, %v1340_v10  ;;  %v451_v47 = vmul.f32 %v435_v30, %v1343_v12 }
 0x10f   : > { %v498_v20 = vmul.f32 0.7978846, %v482_v9  ;;  %v487_v52 = vadd.f32 %v471_v32, %v1315_v58  ;;  %v443_v11 = vmul.f32 %v1356_v33, %v1356_v33  ;;  %v502_v43 = vmul.f32 0.7978846, %v486_v35 }
 0x110   : > { %v501_v54 = vmul.f32 0.7978846, %v485_v37  ;;  %v445_v55 = vmul.f32 %v1362_v38, %v1362_v38  ;;  %v467_v57 = vmul.f32 0.044715, %v451_v47  ;;  %v460_v1 = vmul.f32 %v444_v45, %v1348_v26 }
 0x111   : > { %1010 = vtanh.f32 %v498_v20  ;;  %v459_v0 = vmul.f32 %v443_v11, %v1356_v33  ;;  %v474_v2 = vmul.f32 0.044715, %v458_v46  ;;  %v489_v5 = vadd.f32 %v473_v41, %v1325_v62 }
 0x112   : > { %v1003_v13 = vpop.eup %1002  ;;  %1012 = vtanh.f32 %v500_v44  ;;  %v483_v3 = vadd.f32 %v467_v57, %v1343_v12  ;;  %v503_v7 = vmul.f32 0.7978846, %v487_v52  ;;  %v476_v19 = vmul.f32 0.044715, %v460_v1 }
 0x113   : > { %v1005_v18 = vpop.eup %1004  ;;  %v528_v31 = vadd.f32 1.0, %v1003_v13  ;;  %1014 = vtanh.f32 %v501_v54  ;;  %v490_v20 = vadd.f32 %v474_v2, %v1340_v10 }
 0x114   : > { %v526_v23 = vadd.f32 1.0, %v1005_v18  ;;  %v1007_v27 = vpop.eup %1006  ;;  %v499_v9 = vmul.f32 0.7978846, %v483_v3  ;;  %1016 = vtanh.f32 %v502_v43  ;;  %v504_v18 = vmul.f32 0.7978846, %v488_v36 }
 0x115   : > { %v1009_v34 = vpop.eup %1008  ;;  %v529_v40 = vadd.f32 1.0, %v1007_v27  ;;  %v544_v49 = vmul.f32 0.5, %v528_v31  ;;  %v492_v29 = vadd.f32 %v476_v19, %v1348_v26 }
 0x116   : > { %v542_v39 = vmul.f32 0.5, %v526_v23  ;;  %v527_v42 = vadd.f32 1.0, %v1009_v34  ;;  %1018 = vtanh.f32 %v499_v9  ;;  %v505_v23 = vmul.f32 0.7978846, %v489_v5 }
 0x117   : > { %v545_v61 = vmul.f32 0.5, %v529_v40  ;;  %v560_v4 = vmul.f32 %v544_v49, %v1271_v14  ;;  %1020 = vtanh.f32 %v503_v7  ;;  %v508_v35 = vmul.f32 0.7978846, %v492_v29 }
 0x118   : > { %v543_v50 = vmul.f32 0.5, %v527_v42  ;;  %v558_v60 = vmul.f32 %v542_v39, %v1274_v17  ;;  %v461_v17 = vmul.f32 %v445_v55, %v1362_v38  ;;  %1022 = vtanh.f32 %v504_v18 }
 0x119   : > { %v561_v13 = vmul.f32 %v545_v61, %v1279_v21  ;;  %v506_v21 = vmul.f32 0.7978846, %v490_v20  ;;  %1024 = vtanh.f32 %v505_v23 }
 0x11a   : > { %v559_v63 = vmul.f32 %v543_v50, %v1284_v25  ;;  %v475_v25 = vmul.f32 0.044715, %v459_v0  ;;  %v477_v24 = vmul.f32 0.044715, %v461_v17 }
 0x11b   : > { %v1011_v8 = vpop.eup %1010  ;;  %1026 = vtanh.f32 %v506_v21 }
 0x11c   : > { %v575_v6 = vadd.f32 %v559_v63, %v558_v60  ;;  %v530_v16 = vadd.f32 1.0, %v1011_v8  ;;  %v491_v27 = vadd.f32 %v475_v25, %v1356_v33  ;;  %v1013_v31 = vpop.eup %1012  ;;  %v493_v32 = vadd.f32 %v477_v24, %v1362_v38 }
 0x11d   : > { %v1015_v36 = vpop.eup %1014  ;;  %v532_v39 = vadd.f32 1.0, %v1013_v31 }
 0x11e   : > { %v576_v15 = vadd.f32 %v575_v6, %v560_v4  ;;  %v546_v14 = vmul.f32 0.5, %v530_v16  ;;  %v507_v34 = vmul.f32 0.7978846, %v491_v27  ;;  %v1017_v37 = vpop.eup %1016  ;;  %v509_v41 = vmul.f32 0.7978846, %v493_v32 }
 0x11f   : > { %v533_v42 = vadd.f32 1.0, %v1015_v36  ;;  %v534_v45 = vadd.f32 1.0, %v1017_v37  ;;  %v548_v46 = vmul.f32 0.5, %v532_v39  ;;  %v1131_v39 = vmov (!%p803_p1), 0.0|0.0  }
 0x120   : > { %v577_v22 = vadd.f32 %v576_v15, %v561_v13  ;;  %v562_v28 = vmul.f32 %v546_v14, %v1310_v56  ;;  %v1019_v40 = vpop.eup %1018  ;;  %1028 = vtanh.f32 %v507_v34  ;;  %889 = vmatprep.subr.bf16.mxu0 (!%p803_p1), %v1131_v39 }
 0x121   : > { %v531_v56 = vadd.f32 1.0, %v1019_v40  ;;  %v1021_v44 = vpop.eup %1020  ;;  %1030 = vtanh.f32 %v508_v35  ;;  %v549_v52 = vmul.f32 0.5, %v533_v42  ;;  %v550_v55 = vmul.f32 0.5, %v534_v45  ;;  %v574_v35 = vld [vmem:[#allocation2] sm:$0x1]  ;;  %v608_v45 = vld [vmem:[%s1505_s3 + $0x28] sm:$0xff] (!%p803_p1) }
 0x122   : > { %v578_v30 = vadd.f32 %v577_v22, %v562_v28  ;;  %v1023_v49 = vpop.eup %1022  ;;  %1032 = vtanh.f32 %v509_v41  ;;  %v535_v50 = vadd.f32 1.0, %v1021_v44  ;;  %v564_v57 = vmul.f32 %v548_v46, %v1305_v53  ;;  %v606_v41 = vld [vmem:[%s1505_s3 + $0x18] sm:$0xff] (!%p803_p1)  ;;  %v607_v44 = vld [vmem:[%s1505_s3 + $0x20] sm:$0xff] (!%p803_p1) }
 0x123   : > { %v547_v47 = vmul.f32 0.5, %v531_v56  ;;  %v1025_v43 = vpop.eup %1024  ;;  %v536_v54 = vadd.f32 1.0, %v1023_v49  ;;  %v565_v1 = vmul.f32 %v549_v52, %v1318_v59  ;;  %v566_v5 = vmul.f32 %v550_v55, %v1302_v51  ;;  %v610_v49 = vld [vmem:[%s1505_s3 + $0x38] sm:$0xff] (!%p803_p1)  ;;  %v611_v52 = vld [vmem:[%s1505_s3 + $0x40] sm:$0xff] (!%p803_p1) }
 0x124   : > { %v537_v63 = vadd.f32 1.0, %v1025_v43  ;;  %v551_v0 = vmul.f32 0.5, %v535_v50  ;;  %v1133_v42 = vmov (!%p803_p1), 0.0   ;;  %v896_v46 = vpack.c.bf16 (!%p803_p1), %v608_v45, %v607_v44  ;;  %v614_v55 = vld [vmem:[%s1505_s3 + $0x58] sm:$0xff] (!%p803_p1) }
 0x125   : > { %v563_v11 = vmul.f32 %v547_v47, %v1343_v12  ;;  %v1027_v61 = vpop.eup %1026  ;;  %v552_v4 = vmul.f32 0.5, %v536_v54  ;;  %886 = vmatprep.mubr.msk.f32.mxu0 (!%p803_p1), %vm1132_vm1, %v1133_v42  ;;  %v609_v47 = vld [vmem:[%s1505_s3 + $0x30] sm:$0xff] (!%p803_p1) }
 0x126   : > { %v538_v6 = vadd.f32 1.0, %v1027_v61  ;;  %v553_v12 = vmul.f32 0.5, %v537_v63  ;;  %v567_v17 = vmul.f32 %v551_v0, %v1315_v58  ;;  %v899_v50 = vpack.c.bf16 (!%p803_p1), %v610_v49, %v609_v47  ;;  %v613_v54 = vld [vmem:[%s1505_s3 + $0x50] sm:$0xff] (!%p803_p1)  ;;  %v616_v61 = vld [vmem:[%s1505_s3 + $0x68] sm:$0xff] (!%p803_p1) }
 0x127   : > { %v579_v60 = vadd.f32 %v578_v30, %v563_v11  ;;  %v568_v13 = vmul.f32 %v552_v4, %v1298_v48  ;;  %v612_v11 = vld [vmem:[%s1505_s3 + $0x48] sm:$0xff] (!%p803_p1)  ;;  %v617_v0 = vld [vmem:[%s1505_s3 + $0x70] sm:$0xff] (!%p803_p1) }
 0x128   : > { %v554_v16 = vmul.f32 0.5, %v538_v6  ;;  %v569_v59 = vmul.f32 %v553_v12, %v1325_v62  ;;  %v902_v43 = vpack.c.bf16 (!%p803_p1), %v612_v11, %v611_v52 }
 0x129   : > { %v580_v2 = vadd.f32 %v579_v60, %v564_v57  ;;  %v905_v57 = vpack.c.bf16 (!%p803_p1), %v614_v55, %v613_v54  ;;  %v615_v60 = vld [vmem:[%s1505_s3 + $0x60] sm:$0xff] (!%p803_p1) }
 0x12a   : > { %v1029_v3 = vpop.eup %1028  ;;  %v570_v22 = vmul.f32 %v554_v16, %v1340_v10  ;;  %v908_v63 = vpack.c.bf16 (!%p803_p1), %v616_v61, %v615_v60 }
 0x12b   : > { %v581_v7 = vadd.f32 %v580_v2, %v565_v1  ;;  %v1031_v8 = vpop.eup %1030  ;;  %v539_v25 = vadd.f32 1.0, %v1029_v3  ;;  %v618_v1 = vld [vmem:[%s1505_s3 + $0x78] sm:$0xff] (!%p803_p1) }
 0x12c   : > { %v1033_v53 = vpop.eup %1032  ;;  %v540_v15 = vadd.f32 1.0, %v1031_v8  ;;  %v911_v2 = vpack.c.bf16 (!%p803_p1), %v618_v1, %v617_v0 }
 0x12d   : > { %v582_v9 = vadd.f32 %v581_v7, %v566_v5  ;;  %v541_v19 = vadd.f32 1.0, %v1033_v53  ;;  %v555_v20 = vmul.f32 0.5, %v539_v25 }
 0x12e   : > { %v556_v51 = vmul.f32 0.5, %v540_v15 }
 0x12f   : > { %v583_v18 = vadd.f32 %v582_v9, %v567_v17  ;;  %v557_v24 = vmul.f32 0.5, %v541_v19  ;;  %v571_v58 = vmul.f32 %v555_v20, %v1356_v33  ;;  %v604_v33 = vld [vmem:[%s1505_s3 + $0x8] sm:$0xff] (!%p803_p1) }
 0x130   : > { %v572_v28 = vmul.f32 %v556_v51, %v1348_v26  ;;  %v603_v26 = vld [vmem:[%s1505_s3] sm:$0xff] (!%p803_p1) }
 0x131   : > { %v584_v14 = vadd.f32 %v583_v18, %v568_v13  ;;  %v573_v48 = vmul.f32 %v557_v24, %v1362_v38  ;;  %v605_v38 = vld [vmem:[%s1505_s3 + $0x10] sm:$0xff] (!%p803_p1)  ;;  %v890_v40 = vpack.c.bf16 (!%p803_p1), %v604_v33, %v603_v26 }
 0x132   : > { %v893_v56 = vpack.c.bf16 (!%p803_p1), %v606_v41, %v605_v38 }
 0x133   : > { %v585_v23 = vadd.f32 %v584_v14, %v569_v59  ;;  %891 = vmatpush3.bf16.msra.mxu0 (!%p803_p1), %v890_v40 }
 0x134   : > { %892 = vmatprep.subr.bf16.mxu0 (!%p803_p1), %v1131_v39 }
 0x135   : > { %v586_v27 = vadd.f32 %v585_v23, %v570_v22 }
 0x137   : > { %v587_v29 = vadd.f32 %v586_v27, %v571_v58  ;;  %894 = vmatpush3.bf16.msra.mxu0 (!%p803_p1), %v893_v56 }
 0x138   : > { %895 = vmatprep.subr.bf16.mxu0 (!%p803_p1), %v1131_v39 }
 0x139   : > { %v588_v21 = vadd.f32 %v587_v29, %v572_v28 }
 0x13b   : > { %v589_v30 = vadd.f32 %v588_v21, %v573_v48  ;;  %897 = vmatpush3.bf16.msra.mxu0 (!%p803_p1), %v896_v46 }
 0x13c   : > { %898 = vmatprep.subr.bf16.mxu0 (!%p803_p1), %v1131_v39 }
 0x13d   : > { %v590_v31 = vrot.slane %v589_v30, 4 }
 0x13f   : > { %v591_v62 = vadd.f32 %v590_v31, %v589_v30  ;;  %900 = vmatpush3.bf16.msra.mxu0 (!%p803_p1), %v899_v50 }
 0x140   : > { %901 = vmatprep.subr.bf16.mxu0 (!%p803_p1), %v1131_v39 }
 0x141   : > { %v592_v32 = vrot.slane %v591_v62, 2 }
 0x143   : > { %v593_v34 = vadd.f32 %v592_v32, %v591_v62  ;;  %903 = vmatpush3.bf16.msra.mxu0 (!%p803_p1), %v902_v43 }
 0x144   : > { %904 = vmatprep.subr.bf16.mxu0 (!%p803_p1), %v1131_v39 }
 0x145   : > { %v594_v36 = vrot.slane %v593_v34, 1  ;;  %601 = sbr.rel (%p803_p1) target bundleno = 552 (0x228), region = 44 }
 0x147   : > { %v595_v37 = vadd.f32 %v594_v36, %v593_v34  ;;  %906 = vmatpush3.bf16.msra.mxu0 (!%p803_p1), %v905_v57 }
 0x148   : > { %907 = vmatprep.subr.bf16.mxu0 (!%p803_p1), %v1131_v39 }
 0x149   : > { %v596_v10 = vadd.f32 %v595_v37, %v574_v35 }
 0x14b   : > { %597 = vst [vmem:[#allocation2] sm:$0x1] %v596_v10  ;;  %909 = vmatpush3.bf16.msra.mxu0 (!%p803_p1), %v908_v63 }
 0x14c   : > { %910 = vmatprep.subr.bf16.mxu0 %v1131_v39 }
 0x14f   : > { %912 = vmatpush3.bf16.msra.mxu0 %v911_v2 }
 0x152   : > { %v602_v3 = vld [vmem:[#allocation2] sm:$0x1] }
 0x153   : > { %887 = vmatmul.mubr.f32.vlgmr.msra.gmra.mrb[0].mxu0 %v602_v3 }
 0x226   : > { %v685_v4 = vpop.f32.mrb[0].mxu0 }
 0x227   : > { %689 = vst [vmem:[%s1240_s23] sm:$0x1] %v685_v4  ;;  %v888_v5 = vpop.f32.mrb[1].mxu0 }
 0x228 PF: > { %s804_s18 = sshll.u32 %s1116_s19, 4  ;;  %s703_s10 = sshll.u32 %s1240_s23, 4  ;;  %s704_s10 = int_to_ptr.vmem [resolvable:$true] %s703_s10 }
 0x229   : > { %s1452_s9 = scalar_lea.hbm %s1506_s4, %s804_s18  ;;  %s691_s11 = scalar_lea.sflag [#allocation4], %s211_s6 }
 0x22a   : > { %s1034_s12 = scalar_lea.vmem %s704_s10, 16  ;;  %s1134_s13 = smov [#allocation3]  }
 0x22b   : > { %p1035_p2 = scmp.ne.s32.totalorder %s704_s10, %s1034_s12  ;;  %s1038_s14 = sshll.u32 %s1134_s13, 4  ;;  %s1039_s14 = int_to_ptr.vmem [resolvable:$false] %s1038_s14 }
 0x22c   : > { %s1040_s24 = scalar_lea.vmem %s1039_s14, 32  ;;  %p1041_p6 = scmp.lt.s32.totalorder %s704_s10, %s1039_s14 }
 0x22d   : > { %p1036_p4 = pnand %p1035_p2, %p1209_p3  ;;  %p1042_p7 = scmp.lt.s32.totalorder %s1040_s24, %s1034_s12 }
 0x22f   : > { %p1037_p5 = pneg %p1036_p4  ;;  %p1043_p8 = por %p1042_p7, %p1041_p6 }
 0x231   : > { %p1044_p10 = pnand %p1043_p8, %p1037_p5 }
 0x233   : > { %1047 = shalt.err (!%p1044_p10)
}
 0x234   : > { %s1048_s19 = scalar_lea.hbm %s1452_s9, 16  ;;  %s1052_s29 = scalar_lea.hbm %s1506_s4, 32 }
 0x235   : > { %p1049_p11 = scmp.ne.s32.totalorder %s1452_s9, %s1048_s19  ;;  %p1053_p0 = scmp.lt.u32.totalorder %s1452_s9, %s1506_s4 }
 0x236   : > { %p1054_p1 = scmp.lt.u32.totalorder %s1052_s29, %s1048_s19  ;;  %p1056_p4 = scmp.lt.u32.totalorder %s1048_s19, %s1452_s9 }
 0x237   : > { %p1050_p12 = pnand %p1049_p11, %p1209_p3 }
 0x238   : > { %p1055_p2 = por %p1054_p1, %p1053_p0 }
 0x239   : > { %p1051_p13 = pneg %p1050_p12 }
 0x23a   : > { %p1057_p5 = por %p1056_p4, %p1055_p2 }
 0x23c   : > { %p1058_p6 = pnand %p1057_p5, %p1051_p13 }
 0x23e   : > { %1061 = shalt.err (!%p1058_p6)
}
 0x23f   : > { %917 = dma.vmem_to_hbm [thread:$0]  (%p1209_p3), %s704_s10, 16, %s1452_s9, %s691_s11  }
 0x240 PF: > { %p923_p7 = scmp.ge.s32.totalorder %s1128_s22, 2  ;;  %s715_s7 = sand.u32 1, %s1100_s15  }
 0x241   : > { %s716_s8 = scalar_lea.sflag [#allocation4], %s715_s7 }
 0x242   : > { %p920_p8 = pnand %p923_p7, %p1219_p9 }
 0x244   : > { %1095 = dma.done.wait (!%p920_p8), %s716_s8, 16  }
 0x245   : > { %1097 = vsyncadd (!%p920_p8), %s716_s8, 4294967280  ;;  %s17_s22 = sadd.s32 1, %s1128_s22   ;;  %s1509_s15 = smov %s1104_s16 }
 0x246   : > { %p14_p10 = scmp.ge.s32.totalorder %s17_s22, 6   ;;  %s1510_s16 = smov %s1108_s17 }
 0x247   : > { %s1511_s17 = smov %s1227_s5  ;;  %s1512_s18 = smov %s1120_s20 }
 0x248   : > { %s1513_s19 = smov %s1124_s21  ;;  %s1514_s20 = smov %s1517_s25 }
 0x249   : > { %s1515_s21 = smov %s1521_s26  ;;  %16 = sbr.rel (!%p14_p10) target bundleno = 5 (0x5), region = 79 }
 0x250   :  { %720 = vsyncpa [#allocation4], 1 }
 0x251   :  { %722 = vsyncpa [#allocation4 + $0x1], 1 }

</bundles_post_ra>
